<compile_context>
chip_gen: v5e
topology: v5e:2x2
jax: 0.10.0
libtpu: 0.0.40
codegen_flags: <defaults>
</compile_context>

<pallas_src>
import jax
import jax.numpy as jnp
from jax import lax
from jax.experimental import pallas as pl
from jax.experimental.pallas import tpu as pltpu


def _round_up(n, m):
    return ((n + m - 1) // m) * m


def mlp_kernel(x_ref, w1_ref, b1_ref, w2_ref, b2_ref, o_ref):
    # x_ref : (TM, D)   compute dtype (bf16)
    # w1_ref: (D, 64)   compute dtype   (in_features, out_features)
    # b1_ref: (1, 64)   f32
    # w2_ref: (4, 64)   compute dtype   (out_features, in_features) = PyTorch layout
    # b2_ref: (4, 1)    f32
    # o_ref : (4, TM)   f32  (transposed, lane-dense output tile)
    x = x_ref[...]
    h = jnp.dot(x, w1_ref[...], preferred_element_type=jnp.float32)   # (TM, 64) f32
    h = jnp.maximum(h + b1_ref[...], 0.0)                             # bias + ReLU in f32
    hc = h.astype(w2_ref.dtype)                                       # bf16 for 2nd MXU pass
    # (4, 64) . (TM, 64)^T -> (4, TM): rhs-transposed contraction keeps the
    # result lane-dense along the batch tile.
    o_t = lax.dot_general(
        w2_ref[...], hc,
        dimension_numbers=(((1,), (1,)), ((), ())),
        preferred_element_type=jnp.float32)
    o_ref[...] = (o_t + b2_ref[...]).astype(o_ref.dtype)


def neural_net_forward(x, w1, b1, w2, b2, *, tm=8192,
                       compute_dtype=jnp.bfloat16):
    """Forward pass of NeuralNet.

    x : (B, input_dim)            w1: (input_dim, 64)    b1: (1, 64)
    w2: (4, 64)  (PyTorch out x in layout)               b2: (4, 1)
    Returns logits of shape (B, 4) in float32.
    """
    B, D = x.shape
    H = w1.shape[1]
    O = w2.shape[0]

    # Batch tile: multiple of 128 (lane-dense output), clamped for small B.
    tm = _round_up(tm, 128)
    tm_eff = min(tm, _round_up(B, 128))
    b_pad = _round_up(B, tm_eff)
    if b_pad != B:
        # Zero-pad the batch tail; padded rows are sliced off after the call.
        x = jnp.pad(x, ((0, b_pad - B), (0, 0)))

    x_c = x.astype(compute_dtype)
    w1_c = w1.astype(compute_dtype)
    w2_c = w2.astype(compute_dtype)
    b1_f = b1.astype(jnp.float32)
    b2_f = b2.astype(jnp.float32)

    out_t = pl.pallas_call(
        mlp_kernel,
        out_shape=jax.ShapeDtypeStruct((O, b_pad), jnp.float32),
        grid=(b_pad // tm_eff,),
        in_specs=[
            pl.BlockSpec((tm_eff, D), lambda i: (i, 0)),   # x: streamed batch tiles
            pl.BlockSpec((D, H), lambda i: (0, 0)),        # w1: VMEM-resident
            pl.BlockSpec((1, H), lambda i: (0, 0)),        # b1
            pl.BlockSpec((O, H), lambda i: (0, 0)),        # w2
            pl.BlockSpec((O, 1), lambda i: (0, 0)),        # b2
        ],
        out_specs=pl.BlockSpec((O, tm_eff), lambda i: (0, i)),
        compiler_params=pltpu.CompilerParams(
            dimension_semantics=("parallel",)),
    )(x_c, w1_c, b1_f, w2_c, b2_f)

    # (4, b_pad) -> (B, 4): wrapper-side layout plumbing only.
    return out_t.T[:B]


def init_params(key, input_dim, hidden=64, out_dim=4):
    # Mimic PyTorch Linear default init (uniform +/- 1/sqrt(fan_in)).
    k1, k2, k3, k4 = jax.random.split(key, 4)
    lim1 = 1.0 / jnp.sqrt(jnp.float32(input_dim))
    lim2 = 1.0 / jnp.sqrt(jnp.float32(hidden))
    w1 = jax.random.uniform(k1, (input_dim, hidden), jnp.float32, -lim1, lim1)
    b1 = jax.random.uniform(k2, (1, hidden), jnp.float32, -lim1, lim1)
    w2 = jax.random.uniform(k3, (out_dim, hidden), jnp.float32, -lim2, lim2)  # (out, in)
    b2 = jax.random.uniform(k4, (out_dim, 1), jnp.float32, -lim2, lim2)
    return w1, b1, w2, b2


if __name__ == "__main__":
    key = jax.random.PRNGKey(0)
    kx, kp = jax.random.split(key)

    batch, input_dim = 8, 32
    x = jax.random.normal(kx, (batch, input_dim), jnp.float32)
    w1, b1, w2, b2 = init_params(kp, input_dim)

    out = neural_net_forward(x, w1, b1, w2, b2)
    out = jax.block_until_ready(out)
    assert out.shape == (batch, 4)

    b2_row = b2.reshape(1, -1)

    # Tight check: same bf16-input / f32-accumulate math as the kernel.
    xb = x.astype(jnp.bfloat16)
    w1b = w1.astype(jnp.bfloat16)
    w2b = w2.astype(jnp.bfloat16)
    h_ref = jnp.maximum(
        jnp.dot(xb, w1b, preferred_element_type=jnp.float32) + b1, 0.0)
    ref_bf16 = jnp.dot(h_ref.astype(jnp.bfloat16), w2b.T,
                       preferred_element_type=jnp.float32) + b2_row
    assert jnp.allclose(out, ref_bf16, atol=2e-3, rtol=2e-3), (
        float(jnp.max(jnp.abs(out - ref_bf16))))

    # Loose check: exact f32 PyTorch-equivalent forward (bf16 inputs only
    # perturb the result at the ~1e-2 level for these magnitudes).
    ref_f32 = jnp.maximum(x @ w1 + b1, 0.0) @ w2.T + b2_row
    assert jnp.allclose(out, ref_f32, atol=5e-2, rtol=5e-2), (
        float(jnp.max(jnp.abs(out - ref_f32))))

    print("KERNEL_OK")
</pallas_src>

<mosaic_0001>
module attributes {stable_mosaic.version = 11 : i64} {
  func.func @mlp_kernel(%arg0: i32, %arg1: memref<128x32xbf16, #tpu.memory_space<vmem>>, %arg2: memref<32x64xbf16, #tpu.memory_space<vmem>>, %arg3: memref<1x64xf32, #tpu.memory_space<vmem>>, %arg4: memref<4x64xbf16, #tpu.memory_space<vmem>>, %arg5: memref<4x1xf32, #tpu.memory_space<vmem>>, %arg6: memref<4x128xf32, #tpu.memory_space<vmem>>) attributes {dimension_semantics = [#tpu.dimension_semantics<parallel>], iteration_bounds = array<i64: 1>, scalar_prefetch = 0 : i64, scratch_operands = 0 : i64, tpu.core_type = #tpu.core_type<tc>, window_params = [{transform_indices = @transform_0, window_bounds = array<i64: 128, 32>}, {pipeline_mode = #tpu.pipeline_mode<synchronous>, transform_indices = @transform_1, window_bounds = array<i64: 32, 64>}, {pipeline_mode = #tpu.pipeline_mode<synchronous>, transform_indices = @transform_2, window_bounds = array<i64: 1, 64>}, {pipeline_mode = #tpu.pipeline_mode<synchronous>, transform_indices = @transform_3, window_bounds = array<i64: 4, 64>}, {pipeline_mode = #tpu.pipeline_mode<synchronous>, transform_indices = @transform_4, window_bounds = array<i64: 4, 1>}, {transform_indices = @transform_5, window_bounds = array<i64: 4, 128>}]} {
    %c0 = arith.constant 0 : index
    %c0_0 = arith.constant 0 : index
    %0 = vector.load %arg1[%c0, %c0_0] : memref<128x32xbf16, #tpu.memory_space<vmem>>, vector<128x32xbf16>
    %c0_1 = arith.constant 0 : index
    %c0_2 = arith.constant 0 : index
    %1 = vector.load %arg2[%c0_1, %c0_2] : memref<32x64xbf16, #tpu.memory_space<vmem>>, vector<32x64xbf16>
    %cst = arith.constant dense<0.000000e+00> : vector<128x64xf32>
    %2 = tpu.matmul %0, %1, %cst {dimension_numbers = #tpu.dot_dimension_numbers<[1], [0], [0], [1], [0, 0, 1, 1], [], []>} : vector<128x32xbf16>, vector<32x64xbf16>, vector<128x64xf32> -> vector<128x64xf32>
    %c0_3 = arith.constant 0 : index
    %c0_4 = arith.constant 0 : index
    %3 = vector.load %arg3[%c0_3, %c0_4] : memref<1x64xf32, #tpu.memory_space<vmem>>, vector<1x64xf32>
    %4 = vector.broadcast %3 : vector<1x64xf32> to vector<128x64xf32>
    %5 = arith.addf %2, %4 : vector<128x64xf32>
    %cst_5 = arith.constant 0.000000e+00 : f32
    %6 = vector.broadcast %cst_5 : f32 to vector<128x64xf32>
    %7 = arith.maximumf %5, %6 : vector<128x64xf32>
    %8 = arith.truncf %7 : vector<128x64xf32> to vector<128x64xbf16>
    %c0_6 = arith.constant 0 : index
    %c0_7 = arith.constant 0 : index
    %9 = vector.load %arg4[%c0_6, %c0_7] : memref<4x64xbf16, #tpu.memory_space<vmem>>, vector<4x64xbf16>
    %cst_8 = arith.constant dense<0.000000e+00> : vector<4x128xf32>
    %10 = tpu.matmul %9, %8, %cst_8 {dimension_numbers = #tpu.dot_dimension_numbers<[1], [1], [0], [0], [0, 0, 1, 0], [], []>} : vector<4x64xbf16>, vector<128x64xbf16>, vector<4x128xf32> -> vector<4x128xf32>
    %c0_9 = arith.constant 0 : index
    %c0_10 = arith.constant 0 : index
    %11 = vector.load %arg5[%c0_9, %c0_10] : memref<4x1xf32, #tpu.memory_space<vmem>>, vector<4x1xf32>
    %12 = vector.broadcast %11 : vector<4x1xf32> to vector<4x128xf32>
    %13 = arith.addf %10, %12 : vector<4x128xf32>
    %c0_11 = arith.constant 0 : index
    %c0_12 = arith.constant 0 : index
    %14 = vector.load %arg6[%c0_11, %c0_12] : memref<4x128xf32, #tpu.memory_space<vmem>>, vector<4x128xf32>
    tpu.vector_store %arg6[%c0_11, %c0_12], %13 {strides = array<i32>} : memref<4x128xf32, #tpu.memory_space<vmem>>, vector<4x128xf32>,
    return
  }
  func.func @transform_0(%arg0: i32) -> (i32, i32) {
    %c0_i32 = arith.constant 0 : i32
    %c0_i32_0 = arith.constant 0 : i32
    return %arg0, %c0_i32 : i32, i32
  }
  func.func @transform_1(%arg0: i32) -> (i32, i32) {
    %c0_i32 = arith.constant 0 : i32
    %c0_i32_0 = arith.constant 0 : i32
    %c0_i32_1 = arith.constant 0 : i32
    return %c0_i32, %c0_i32_0 : i32, i32
  }
  func.func @transform_2(%arg0: i32) -> (i32, i32) {
    %c0_i32 = arith.constant 0 : i32
    %c0_i32_0 = arith.constant 0 : i32
    %c0_i32_1 = arith.constant 0 : i32
    return %c0_i32, %c0_i32_0 : i32, i32
  }
  func.func @transform_3(%arg0: i32) -> (i32, i32) {
    %c0_i32 = arith.constant 0 : i32
    %c0_i32_0 = arith.constant 0 : i32
    %c0_i32_1 = arith.constant 0 : i32
    return %c0_i32, %c0_i32_0 : i32, i32
  }
  func.func @transform_4(%arg0: i32) -> (i32, i32) {
    %c0_i32 = arith.constant 0 : i32
    %c0_i32_0 = arith.constant 0 : i32
    %c0_i32_1 = arith.constant 0 : i32
    return %c0_i32, %c0_i32_0 : i32, i32
  }
  func.func @transform_5(%arg0: i32) -> (i32, i32) {
    %c0_i32 = arith.constant 0 : i32
    %c0_i32_0 = arith.constant 0 : i32
    return %c0_i32, %arg0 : i32, i32
  }
}

</mosaic_0001>

<bundles_post_ra>
// kernel: tpu_custom_call.1
= control target key start
LH: loop header
LB: loop body
LE: loop exit
PB: predicated region body
PF: predicated region fallthrough
CT: control target
= control target key end

     0   :  { %s463_s0 = inlined_call_operand.vmem [shape: bf16[128,32], index: 0, kind: input, shape index: {}]   ;;  %s464_s1 = inlined_call_operand.vmem [shape: bf16[32,64], index: 1, kind: input, shape index: {}]   ;;  %s465_s2 = inlined_call_operand.vmem [shape: f32[1,64], index: 2, kind: input, shape index: {}]   ;;  %s466_s3 = inlined_call_operand.vmem [shape: bf16[4,64], index: 3, kind: input, shape index: {}]   ;;  %s467_s4 = inlined_call_operand.vmem [shape: f32[4,1], index: 4, kind: input, shape index: {}]   ;;  %s468_s5 = inlined_call_operand.hbm [shape: f32[4,128], index: 5, kind: output, shape index: {}]  }
   0x1   :  { %v319_v0 = vld [vmem:[%s464_s1 + $0x8] sm:$0xff]  ;;  %v318_v1 = vld [vmem:[%s464_s1] sm:$0xff] }
   0x2   :  { %321 = vmatpush.bf16.msra.mxu3 %v319_v0  ;;  %129 = vmatpush.bf16.msra.mxu0 %v319_v0 }
   0x3   :  { %10 = vsyncpa [#allocation3], 0  ;;  %320 = vmatpush.bf16.msra.mxu2 %v319_v0  ;;  %v314_v2 = vld [vmem:[%s463_s0 + $0x20] sm:$0xff]  ;;  %vm98_vm0 = vcmask 261120   ;;  %v315_v3 = vld [vmem:[%s463_s0 + $0x28] sm:$0xff]  ;;  %vm203_vm1 = vcmask 523264  }
   0x4   :  { %v310_v4 = vld [vmem:[%s463_s0] sm:$0xff]  ;;  %v313_v5 = vld [vmem:[%s463_s0 + $0x18] sm:$0xff]  ;;  %v316_v6 = vld [vmem:[%s463_s0 + $0x30] sm:$0xff]  ;;  %v354_v62 = vmov 0   ;;  %s355_s15 = smov [#allocation2]   ;;  %s252_s19 = sshll.u32 %s468_s5, 4  ;;  %s253_s19 = int_to_ptr.hbm [resolvable:$true] %s252_s19 }
   0x5   :  { %v311_v7 = vld [vmem:[%s463_s0 + $0x8] sm:$0xff]  ;;  %v317_v8 = vld [vmem:[%s463_s0 + $0x38] sm:$0xff]  ;;  %v312_v9 = vld [vmem:[%s463_s0 + $0x10] sm:$0xff]  ;;  %326 = vset.pattern.permute.xlu0 %v354_v62  ;;  %s250_s16 = sshll.u32 %s355_s15, 4  ;;  %s251_s16 = int_to_ptr.vmem [resolvable:$true] %s250_s16 }
   0x6   :  { %323 = vmatpush.bf16.msra.mxu3 %v318_v1  ;;  %130 = vmatpush.bf16.msra.mxu0 %v318_v1  ;;  %v427_v11 = vld [vmem:[%s465_s2] ss:$0 sm:$0xff] }
   0x7   :  { %322 = vmatpush.bf16.msra.mxu2 %v318_v1  ;;  %v197_v61 = vld [vmem:[%s467_s4] sm:$0xf] }
   0x8   :  { %200 = vperm.xlu0 %326, %v197_v61  }
   0x9   :  { %305 = vmatmul.msk.bf16.vlgmr.msra.gmra.mxu3 %vm98_vm0, %v314_v2  ;;  %301 = vmatmul.msk.bf16.vlgmr.msra.gmra.mxu0 %vm98_vm0, %v310_v4 }
   0xa   :  { %304 = vmatmul.msk.bf16.vlgmr.msra.gmra.mxu2 %vm98_vm0, %v313_v5 }
  0x19   :  { %306 = vmatmul.msk.bf16.gmra.mxu3 %vm98_vm0, %v315_v3  ;;  %302 = vmatmul.msk.bf16.gmra.mxu0 %vm98_vm0, %v311_v7 }
  0x29   :  { %307 = vmatmul.msk.bf16.gmra.mxu3 %vm98_vm0, %v316_v6  ;;  %303 = vmatmul.msk.bf16.gmra.mxu0 %vm98_vm0, %v312_v9 }
  0x39   :  { %308 = vmatmul.msk.bf16.gmra.mxu3 %vm98_vm0, %v317_v8 }
  0x86   :  { %v132_v21 = vpop.f32.mrf.mxu0 }
  0x87   :  { %v133_v5 = vadd.f32 %v427_v11, %v132_v21 }
  0x89   :  { %v172_v8 = vmax.f32 %v133_v5, 0.0 }
  0x8c   :  { %v152_v10 = vpop.f32.mrf.mxu3 }
  0x8d   :  { %v153_v12 = vadd.f32 %v427_v11, %v152_v10  ;;  %v147_v41 = vpop.f32.mrf.mxu2 }
  0x8e   :  { %v134_v24 = vpop.f32.mrf.mxu0  ;;  %v148_v49 = vadd.f32 %v427_v11, %v147_v41 }
  0x8f   :  { %v180_v15 = vmax.f32 %v153_v12, 0.0  ;;  %v135_v6 = vadd.f32 %v427_v11, %v134_v24 }
  0x90   :  { %v178_v51 = vmax.f32 %v148_v49, 0.0 }
  0x91   :  { %v173_v9 = vmax.f32 %v135_v6, 0.0 }
  0x93   :  { %v188_v12 = vpack.c.bf16 %v173_v9, %v172_v8 }
  0x94   :  { %v154_v13 = vpop.f32.mrf.mxu3 }
  0x95   :  { %v155_v14 = vadd.f32 %v427_v11, %v154_v13  ;;  %v149_v48 = vpop.f32.mrf.mxu2  ;;  %v208_v13 = vsel %vm203_vm1, %v188_v12, 0 }
  0x96   :  { %v137_v28 = vpop.f32.mrf.mxu0  ;;  %v150_v50 = vadd.f32 %v427_v11, %v149_v48 }
  0x97   :  { %v181_v16 = vmax.f32 %v155_v14, 0.0  ;;  %v138_v63 = vadd.f32 %v427_v11, %v137_v28  ;;  %v196_v14 = vld [vmem:[%s466_s3] sm:$0x3] }
  0x98   :  { %v179_v52 = vmax.f32 %v150_v50, 0.0 }
  0x99   :  { %v192_v17 = vpack.c.bf16 %v181_v16, %v180_v15  ;;  %v174_v2 = vmax.f32 %v138_v63, 0.0  ;;  %v201_v15 = vpop.permute.xlu0 %200 }
  0x9a   :  { %v191_v57 = vpack.c.bf16 %v179_v52, %v178_v51 }
  0x9b   :  { %v220_v53 = vsel %vm203_vm1, %v192_v17, 0 }
  0x9c   :  { %v157_v18 = vpop.f32.mrf.mxu3  ;;  %v217_v60 = vsel %vm203_vm1, %v191_v57, 0 }
  0x9d   :  { %v158_v40 = vadd.f32 %v427_v11, %v157_v18 }
  0x9e   :  { %v139_v39 = vpop.f32.mrf.mxu0 }
  0x9f   :  { %v182_v44 = vmax.f32 %v158_v40, 0.0  ;;  %v140_v0 = vadd.f32 %v427_v11, %v139_v39 }
  0xa1   :  { %v175_v3 = vmax.f32 %v140_v0, 0.0 }
  0xa3   :  { %v189_v7 = vpack.c.bf16 %v175_v3, %v174_v2 }
  0xa4   :  { %v159_v19 = vpop.f32.mrf.mxu3 }
  0xa5   :  { %v160_v37 = vadd.f32 %v427_v11, %v159_v19  ;;  %v211_v10 = vsel %vm203_vm1, %v189_v7, 0 }
  0xa6   :  { %v142_v46 = vpop.f32.mrf.mxu0 }
  0xa7   :  { %v183_v42 = vmax.f32 %v160_v37, 0.0  ;;  %v143_v55 = vadd.f32 %v427_v11, %v142_v46 }
  0xa9   :  { %v193_v45 = vpack.c.bf16 %v183_v42, %v182_v44  ;;  %v176_v58 = vmax.f32 %v143_v55, 0.0 }
  0xab   :  { %v223_v47 = vsel %vm203_vm1, %v193_v45, 0 }
  0xac   :  { %v162_v20 = vpop.f32.mrf.mxu3 }
  0xad   :  { %v163_v32 = vadd.f32 %v427_v11, %v162_v20 }
  0xae   :  { %v144_v54 = vpop.f32.mrf.mxu0 }
  0xaf   :  { %v184_v36 = vmax.f32 %v163_v32, 0.0  ;;  %v145_v56 = vadd.f32 %v427_v11, %v144_v54 }
  0xb1   :  { %v177_v59 = vmax.f32 %v145_v56, 0.0 }
  0xb3   :  { %v190_v1 = vpack.c.bf16 %v177_v59, %v176_v58 }
  0xb4   :  { %v164_v22 = vpop.f32.mrf.mxu3 }
  0xb5   :  { %v165_v29 = vadd.f32 %v427_v11, %v164_v22  ;;  %v214_v4 = vsel %vm203_vm1, %v190_v1, 0 }
  0xb7   :  { %v185_v34 = vmax.f32 %v165_v29, 0.0 }
  0xb9   :  { %v194_v38 = vpack.c.bf16 %v185_v34, %v184_v36 }
  0xbb   :  { %v226_v43 = vsel %vm203_vm1, %v194_v38, 0 }
  0xbc   :  { %v167_v23 = vpop.f32.mrf.mxu3 }
  0xbd   :  { %v168_v25 = vadd.f32 %v427_v11, %v167_v23 }
  0xbf   :  { %v186_v30 = vmax.f32 %v168_v25, 0.0 }
  0xc4   :  { %v169_v26 = vpop.f32.mrf.mxu3 }
  0xc5   :  { %v170_v27 = vadd.f32 %v427_v11, %v169_v26 }
  0xc7   :  { %v187_v31 = vmax.f32 %v170_v27, 0.0 }
  0xc9   :  { %v195_v33 = vpack.c.bf16 %v187_v31, %v186_v30 }
  0xcb   :  { %v229_v35 = vsel %vm203_vm1, %v195_v33, 0 }
  0xcc   :  { %231 = vmatpush.bf16.xpose.msra.mxu1 %v229_v35 }
  0xd4   :  { %232 = vmatpush.bf16.xpose.msra.mxu1 %v226_v43 }
  0xdc   :  { %233 = vmatpush.bf16.xpose.msra.mxu1 %v223_v47 }
  0xe4   :  { %234 = vmatpush.bf16.xpose.msra.mxu1 %v220_v53 }
  0xec   :  { %235 = vmatpush.bf16.xpose.msra.mxu1 %v217_v60 }
  0xf4   :  { %236 = vmatpush.bf16.xpose.msra.mxu1 %v214_v4 }
  0xfc   :  { %237 = vmatpush.bf16.xpose.msra.mxu1 %v211_v10 }
 0x104   :  { %238 = vmatpush.bf16.xpose.msra.mxu1 %v208_v13 }
 0x10b   :  { %309 = vmatmul.msk.bf16.vlgmr.msra.gmra.mxu1 %vm203_vm1, %v196_v14 }
 0x188   :  { %v240_v11 = vpop.f32.mrf.mxu1 }
 0x189   :  { %v241_v16 = vadd.f32 %v240_v11, %v201_v15 }
 0x18b   :  { %244 = vst [vmem:[#allocation2] sm:$0xf] %v241_v16 }
 0x18c   :  { %255 = dma.vmem_to_hbm [thread:$0]  %s251_s16, 64, %s253_s19, [#allocation3]  }
 0x190   :  { %v242_v17 = vpop.f32.mrf.mxu1 }
 0x191   :  { %352 = dma.done.wait [#allocation3], 64  }
 0x192   :  { %353 = vsyncadd [#allocation3], 4294967232 }
 0x193   :  { %260 = vsyncpa [#allocation3], 1 }

</bundles_post_ra>
